<compile_context>
chip_gen: v6e
topology: v6e:2x2x1
jax: 0.10.0
libtpu: 0.0.40
codegen_flags: <defaults>
</compile_context>

<pallas_src>
import jax
import jax.numpy as jnp
from jax.experimental import pallas as pl
from jax.experimental.pallas import tpu as pltpu


def _rel_temporal_kernel(x_ref, w_ref, b_ref, o_ref):
    # x_ref: (1, 1, TCB, P)     packed input rows (P consecutive C positions per row)
    # w_ref: (P, P*O)           block-diagonal expanded weight (grid-constant)
    # b_ref: (1, P*O)           lane-tiled bias                (grid-constant)
    # o_ref: (1, 1, TCB, P*O)   lane-dense output block, already in (B,A,C,O) order
    x = x_ref[0, 0]                                               # (TCB, P)
    y = jnp.dot(x, w_ref[...], preferred_element_type=jnp.float32)
    o_ref[0, 0] = y + b_ref[...]                                  # bias broadcasts over rows


def relative_temporal_layer(relative_values, weight, bias, *, max_rows_per_tile=2048):
    """relative_values: (A, B, C); weight: (O, 1) torch Linear layout; bias: (O,).

    Returns (B, A, C, O) float32, matching permute(linear(unsqueeze(x, -1)), (1,0,2,3)).
    """
    A, B, C = relative_values.shape
    O = weight.shape[0]

    # Lane packing factor: P consecutive C positions share one 128-lane output row
    # (unmasked, lane-dense stores). Fallback to P = 1 when shapes don't allow it.
    if O <= 128 and 128 % O == 0 and C % (128 // O) == 0:
        P = 128 // O
    else:
        P = 1
    Cp = C // P
    PO = P * O

    # Free views / one-time host-side precompute (NOT inside the kernel body).
    x4 = relative_values.astype(jnp.float32).reshape(A, B, Cp, P)
    w_row = weight.astype(jnp.float32).reshape(1, O)
    # W_expand[i, i*O + o] = w[o]  ->  (x_row @ W_expand) lays each scalar's O outputs
    # into its own lane group, exactly matching (.., C, O) memory order.
    w_expand = jnp.kron(jnp.eye(P, dtype=jnp.float32), w_row)          # (P, P*O)
    b_tile = jnp.tile(bias.astype(jnp.float32).reshape(1, O), (1, P))  # (1, P*O)

    # Row-tile size along the packed-C axis: whole axis if small, else a multiple of 8.
    # Double-buffered in+out tiles at 2048 rows use ~8 MiB VMEM -> safe on v5e/v6e/v7x.
    tcb = Cp if Cp <= max_rows_per_tile else max_rows_per_tile
    n_ct = pl.cdiv(Cp, tcb)

    out4 = pl.pallas_call(
        _rel_temporal_kernel,
        out_shape=jax.ShapeDtypeStruct((B, A, Cp, PO), jnp.float32),
        grid=(B, A, n_ct),
        in_specs=[
            # Input is (A, B, Cp, P): swapping a/b here folds the (1,0,2,3) permute
            # into the kernel's read pattern.
            pl.BlockSpec((1, 1, tcb, P), lambda b, a, t: (a, b, t, 0)),
            pl.BlockSpec((P, PO), lambda b, a, t: (0, 0)),
            pl.BlockSpec((1, PO), lambda b, a, t: (0, 0)),
        ],
        out_specs=pl.BlockSpec((1, 1, tcb, PO), lambda b, a, t: (b, a, t, 0)),
        compiler_params=pltpu.CompilerParams(
            dimension_semantics=("parallel", "parallel", "parallel"),
            vmem_limit_bytes=32 * 1024 * 1024,
        ),
        cost_estimate=pl.CostEstimate(
            flops=2 * A * B * C * O,
            transcendentals=0,
            bytes_accessed=A * B * C * 4 + A * B * C * O * 4 + P * PO * 4 + PO * 4,
        ),
    )(x4, w_expand, b_tile)

    # (B, A, Cp, P*O) and (B, A, C, O) share the same memory order -> free reshape.
    return out4.reshape(B, A, C, O)


if __name__ == "__main__":
    key = jax.random.PRNGKey(0)
    k_x, k_w, k_b = jax.random.split(key, 3)

    # Shapes implied by the forward: relative_values is 3-D, input_size must be 1
    # (because of unsqueeze(-1)), output_size = 32.
    A, B, C, O = 2, 4, 16, 32

    relative_values = jax.random.normal(k_x, (A, B, C), dtype=jnp.float32)
    # nn.Linear(1, O) init range: uniform(-1/sqrt(fan_in), 1/sqrt(fan_in)), fan_in=1.
    weight = jax.random.uniform(k_w, (O, 1), minval=-1.0, maxval=1.0, dtype=jnp.float32)
    bias = jax.random.uniform(k_b, (O,), minval=-1.0, maxval=1.0, dtype=jnp.float32)

    out = relative_temporal_layer(relative_values, weight, bias)
    out = jax.block_until_ready(out)

    # Pure-JAX reference for the PyTorch forward.
    ref = relative_values[..., None] * weight.reshape(1, 1, 1, O) + bias.reshape(1, 1, 1, O)
    ref = jnp.transpose(ref, (1, 0, 2, 3))

    assert out.shape == (B, A, C, O), out.shape
    assert jnp.allclose(out, ref, atol=1e-5, rtol=1e-5), float(jnp.max(jnp.abs(out - ref)))
    print("KERNEL_OK")
</pallas_src>

<mosaic_0001>
module attributes {stable_mosaic.version = 11 : i64} {
  func.func @_rel_temporal_kernel(%arg0: i32, %arg1: i32, %arg2: i32, %arg3: memref<1x1x4x4xf32, #tpu.memory_space<vmem>>, %arg4: memref<4x128xf32, #tpu.memory_space<vmem>>, %arg5: memref<1x128xf32, #tpu.memory_space<vmem>>, %arg6: memref<1x1x4x128xf32, #tpu.memory_space<vmem>>) attributes {dimension_semantics = [#tpu.dimension_semantics<parallel>, #tpu.dimension_semantics<parallel>, #tpu.dimension_semantics<parallel>], iteration_bounds = array<i64: 4, 2, 1>, scalar_prefetch = 0 : i64, scratch_operands = 0 : i64, tpu.core_type = #tpu.core_type<tc>, window_params = [{transform_indices = @transform_0, window_bounds = array<i64: 1, 1, 4, 4>}, {pipeline_mode = #tpu.pipeline_mode<synchronous>, transform_indices = @transform_1, window_bounds = array<i64: 4, 128>}, {pipeline_mode = #tpu.pipeline_mode<synchronous>, transform_indices = @transform_2, window_bounds = array<i64: 1, 128>}, {transform_indices = @transform_3, window_bounds = array<i64: 1, 1, 4, 128>}]} {
    %c0 = arith.constant 0 : index
    %c0_0 = arith.constant 0 : index
    %c0_1 = arith.constant 0 : index
    %c0_2 = arith.constant 0 : index
    %0 = vector.load %arg3[%c0, %c0_0, %c0_1, %c0_2] : memref<1x1x4x4xf32, #tpu.memory_space<vmem>>, vector<1x1x4x4xf32>
    %1 = vector.shape_cast %0 : vector<1x1x4x4xf32> to vector<4x4xf32>
    %c0_3 = arith.constant 0 : index
    %c0_4 = arith.constant 0 : index
    %2 = vector.load %arg4[%c0_3, %c0_4] : memref<4x128xf32, #tpu.memory_space<vmem>>, vector<4x128xf32>
    %cst = arith.constant dense<0.000000e+00> : vector<4x128xf32>
    %3 = tpu.matmul %1, %2, %cst {dimension_numbers = #tpu.dot_dimension_numbers<[1], [0], [0], [1], [0, 0, 1, 1], [], []>} : vector<4x4xf32>, vector<4x128xf32>, vector<4x128xf32> -> vector<4x128xf32>
    %c0_5 = arith.constant 0 : index
    %c0_6 = arith.constant 0 : index
    %4 = vector.load %arg5[%c0_5, %c0_6] : memref<1x128xf32, #tpu.memory_space<vmem>>, vector<1x128xf32>
    %5 = vector.broadcast %4 : vector<1x128xf32> to vector<4x128xf32>
    %6 = arith.addf %3, %5 : vector<4x128xf32>
    %c0_7 = arith.constant 0 : index
    %c0_8 = arith.constant 0 : index
    %c0_9 = arith.constant 0 : index
    %c0_10 = arith.constant 0 : index
    %7 = vector.load %arg6[%c0_7, %c0_8, %c0_9, %c0_10] : memref<1x1x4x128xf32, #tpu.memory_space<vmem>>, vector<1x1x4x128xf32>
    %8 = vector.shape_cast %7 : vector<1x1x4x128xf32> to vector<4x128xf32>
    %9 = vector.shape_cast %6 : vector<4x128xf32> to vector<1x1x4x128xf32>
    tpu.vector_store %arg6[%c0_7, %c0_8, %c0_9, %c0_10], %9 {strides = array<i32>} : memref<1x1x4x128xf32, #tpu.memory_space<vmem>>, vector<1x1x4x128xf32>,
    return
  }
  func.func @transform_0(%arg0: i32, %arg1: i32, %arg2: i32) -> (i32, i32, i32, i32) {
    %c0_i32 = arith.constant 0 : i32
    %c0_i32_0 = arith.constant 0 : i32
    return %arg1, %arg0, %arg2, %c0_i32 : i32, i32, i32, i32
  }
  func.func @transform_1(%arg0: i32, %arg1: i32, %arg2: i32) -> (i32, i32) {
    %c0_i32 = arith.constant 0 : i32
    %c0_i32_0 = arith.constant 0 : i32
    %c0_i32_1 = arith.constant 0 : i32
    return %c0_i32, %c0_i32_0 : i32, i32
  }
  func.func @transform_2(%arg0: i32, %arg1: i32, %arg2: i32) -> (i32, i32) {
    %c0_i32 = arith.constant 0 : i32
    %c0_i32_0 = arith.constant 0 : i32
    %c0_i32_1 = arith.constant 0 : i32
    return %c0_i32, %c0_i32_0 : i32, i32
  }
  func.func @transform_3(%arg0: i32, %arg1: i32, %arg2: i32) -> (i32, i32, i32, i32) {
    %c0_i32 = arith.constant 0 : i32
    %c0_i32_0 = arith.constant 0 : i32
    return %arg0, %arg1, %arg2, %c0_i32 : i32, i32, i32, i32
  }
}

</mosaic_0001>

<bundles_post_ra>
// kernel: tpu_custom_call.1
= control target key start
LH: loop header
LB: loop body
LE: loop exit
PB: predicated region body
PF: predicated region fallthrough
CT: control target
= control target key end

     0   :  { %s925_s0 = inlined_call_operand.hbm [shape: f32[2,4,4,4], index: 0, kind: input, shape index: {}]   ;;  %s926_s1 = inlined_call_operand.hbm [shape: f32[4,128], index: 1, kind: input, shape index: {}]   ;;  %s927_s2 = inlined_call_operand.vmem [shape: f32[1,128], index: 2, kind: input, shape index: {}]   ;;  %s928_s3 = inlined_call_operand.hbm [shape: f32[4,2,4,128], index: 3, kind: output, shape index: {}]  }
   0x1   :  { %934 = sst [smem:[#allocation14_spill]] %s926_s1 }
   0x2   :  { %935 = sst [smem:[#allocation15_spill]] %s928_s3 }
   0x3   :  { %8 = vsyncpa [#allocation3], 0 }
   0x4   :  { %10 = vsyncpa [#allocation3 + $0x1], 0 }
   0x5   :  { %11 = vsyncpa [#allocation6], 0 }
   0x6   :  { %12 = vsyncpa [#allocation4], 0 }
   0x7   :  { %14 = vsyncpa [#allocation4 + $0x1], 0  ;;  %s733_s12 = smov 0   ;;  %s735_s13 = smov 0  }
   0x8   :  { %s737_s14 = smov 0   ;;  %s739_s15 = smov 0  }
   0x9   :  { %s741_s16 = smov 0   ;;  %s743_s17 = smov 0  }
   0xa   :  { %s745_s18 = smov 0   ;;  %s747_s19 = smov 0  }
   0xb LB: > { %936 = sst [smem:[#allocation11_spill]] %s678_s12  ;;  %s434_s20 = sadd.s32 4294967295, %s706_s19   ;;  %s706_s19 = sphi %s747_s19, %s20_s19   ;;  %s702_s18 = sphi %s745_s18, %s960_s18   ;;  %s698_s17 = sphi %s743_s17, %s959_s17   ;;  %s694_s16 = sphi %s741_s16, %s958_s16   ;;  %s690_s15 = sphi %s739_s15, %s957_s15   ;;  %s686_s14 = sphi %s737_s14, %s956_s14   ;;  %s682_s13 = sphi %s735_s13, %s955_s13   ;;  %s678_s12 = sphi %s733_s12, %s954_s12  }
   0xc   : > { %s435_s21 = sadd.s32 4294967294, %s706_s19   ;;  %p63_p0 = scmp.ne.s32.totalorder %s682_s13, %s678_s12 }
   0xd   : > { %p777_p1 = scmp.eq.s32.totalorder %s434_s20, 0  ;;  %p781_p2 = scmp.eq.s32.totalorder %s434_s20, 7 }
   0xe   : > { %p139_p3 = scmp.eq.s32.totalorder %s435_s21, 7  ;;  %p436_p5 = scmp.ge.s32.totalorder %s706_s19, 1 }
   0xf   : > { %p787_p4 = por %p777_p1, %p63_p0  ;;  %p146_p7 = scmp.lt.s32.totalorder %s706_s19, 9 }
  0x10   : > { %p792_p6 = por %p139_p3, %p63_p0  ;;  %s708_s27 = smov [#allocation5]  }
  0x11   : > { %p797_p8 = pnand %p436_p5, %p146_p7  ;;  %s159_s28 = sshll.u32 %s708_s27, 4  ;;  %s160_s28 = int_to_ptr.vmem [resolvable:$true] %s159_s28 }
  0x12   : > { %s940_s25 = scalar_select %p792_p6, 1, 0 }
  0x13   : > { %p469_p9 = pneg %p797_p8  ;;  %s35_s29 = sadd.s32 1, %s698_s17 }
  0x14   : > { %941 = sst [smem:[#allocation12_spill]] %s940_s25  ;;  %s563_s30 = scalar_lea.vmem %s160_s28, 64 }
  0x15   : > { %p470_p10 = pnand %p469_p9, %p777_p1  ;;  %p564_p12 = scmp.ne.s32.totalorder %s160_s28, %s563_s30 }
  0x16   : > { %p571_p3 = scmp.lt.s32.totalorder %s160_s28, %s160_s28  ;;  %p572_p6 = scmp.lt.s32.totalorder %s563_s30, %s563_s30 }
  0x17   : > { %p554_p11 = pneg %p470_p10 }
  0x18   : > { %p573_p5 = por %p572_p6, %p571_p3 }
  0x19   : > { %p566_p13 = pnand %p564_p12, %p554_p11 }
  0x1b   : > { %p567_p0 = pneg %p566_p13 }
  0x1d   : > { %p574_p7 = pnand %p573_p5, %p567_p0 }
  0x1f   : > { %577 = shalt.err (!%p574_p7)
}
  0x20   : > { %s943_s1 = sld [smem:[#allocation14_spill]]  ;;  %p37_p9 = scmp.ge.s32.totalorder %s35_s29, 2 }
  0x21   : > { %s39_s6 = sadd.s32 1, %s702_s18  ;;  %s50_s7 = sadd.s32 1, %s686_s14 }
  0x22   : > { %p57_p6 = scmp.ne.s32.totalorder %s686_s14, %s682_s13  ;;  %s962_s29 = smov (%p37_p9, %s35_s29), 0 }
  0x23   : > { %944 = sst [smem:[#allocation13_spill]] %s962_s29  ;;  %s964_s6 = smov (!%p37_p9, %s39_s6), %s702_s18 }
  0x24   : > { %s43_s8 = ssub.s32 %s698_s17, %s962_s29  ;;  %p58_p11 = scmp.eq.s32.totalorder %s706_s19, 0 }
  0x25   : > { %p41_p12 = scmp.ge.s32.totalorder %s964_s6, 4  ;;  %p821_p13 = por %p781_p2, %p57_p6 }
  0x26   : > { %472 = dma.hbm_to_vmem [thread:$0]  (!%p470_p10), %s943_s1, 64, %s160_s28, [#allocation6]  }
  0x27   : > { %s945_s9 = scalar_select %p821_p13, 1, 0 }
  0x28   : > { %p825_p10 = por %p58_p11, %p57_p6  ;;  %p482_p0 = scmp.lt.s32.totalorder %s706_s19, 8 }
  0x29   : > { %s966_s6 = smov (%p41_p12, %s964_s6), 0  ;;  %s173_s11 = sand.u32 1, %s686_s14  }
  0x2a   : > { %s440_s20 = sshll.u32 %s698_s17, 2  ;;  %s44_s21 = ssub.s32 %s702_s18, %s966_s6 }
  0x2b   : > { %s45_s27 = sor.u32 %s44_s21, %s43_s8  ;;  %s439_s28 = sshll.u32 %s173_s11, 2 }
  0x2c   : > { %p48_p3 = scmp.eq.s32.totalorder %s45_s27, 0  ;;  %s183_s23 = sadd.s32 %s702_s18, %s440_s20 }
  0x2d   : > { %s177_s30 = scalar_lea.vmem [#allocation2], %s439_s28  ;;  %s441_s1 = sshll.u32 %s183_s23, 6 }
  0x2e   : > { %s187_s4 = sshll.u32 %s177_s30, 4  ;;  %s185_s12 = scalar_lea.hbm %s925_s0, %s441_s1  ;;  %s188_s4 = int_to_ptr.vmem [resolvable:$true] %s187_s4 }
  0x2f   : > { %s838_s5 = scalar_select %p48_p3, %s686_s14, %s50_s7  }
  0x30   : > { %p847_p2 = pnand %p482_p0, %p825_p10  ;;  %s174_s8 = scalar_lea.sflag [#allocation3], %s173_s11 }
  0x31   : > { %s591_s20 = scalar_lea.vmem %s188_s4, 64  ;;  %s709_s7 = smov [#allocation2]  }
  0x32   : > { %p580_p5 = pneg %p847_p2  ;;  %p592_p7 = scmp.ne.s32.totalorder %s188_s4, %s591_s20 }
  0x33   : > { %s596_s21 = sshll.u32 %s709_s7, 4  ;;  %s597_s21 = int_to_ptr.vmem [resolvable:$false] %s596_s21 }
  0x34   : > { %p594_p9 = pnand %p592_p7, %p580_p5  ;;  %s598_s27 = scalar_lea.vmem %s597_s21, 128 }
  0x35   : > { %p599_p11 = scmp.lt.s32.totalorder %s188_s4, %s597_s21  ;;  %p600_p12 = scmp.lt.s32.totalorder %s598_s27, %s591_s20 }
  0x36   : > { %p595_p6 = pneg %p594_p9 }
  0x37   : > { %p601_p3 = por %p600_p12, %p599_p11 }
  0x39   : > { %p602_p13 = pnand %p601_p3, %p595_p6 }
  0x3b   : > { %605 = shalt.err (!%p602_p13)
}
  0x3c   : > { %476 = dma.hbm_to_vmem [thread:$0]  (!%p847_p2), %s185_s12, 64, %s188_s4, %s174_s8  }
  0x3d   : > { %196 = sbr.rel (%p797_p8) target bundleno = 280 (0x118), region = 32  ;;  %s858_s1 = sand.u32 (!%p797_p8), 1, %s682_s13  }
  0x3e   : > { %s443_s25 = sshll.u32 (!%p797_p8), %s858_s1, 2  ;;  %s199_s29 = scalar_lea.sflag (!%p797_p8), [#allocation3], %s858_s1 }
  0x3f   : > { %s202_s10 = scalar_lea.vmem (!%p797_p8), [#allocation2], %s443_s25 }
  0x42   : > { %665 = dma.done.wait (%p787_p4), %s199_s29, 64  }
  0x43   : > { %667 = vsyncadd (%p787_p4), %s199_s29, 4294967232 }
  0x44   : > { %669 = dma.done.wait (%p777_p1), [#allocation6], 64  }
  0x45   : > { %671 = vsyncadd (%p777_p1), [#allocation6], 4294967232  ;;  %v710_v0 = vmov 0.0   ;;  %vm711_vm0 = vmmov 0   ;;  %vm242_vm1 = vcmask 1043456   ;;  %vm238_vm2 = vcmask 31744  }
  0x46   : > { %456 = vmatprep.subr.mxu0 %v710_v0  ;;  %458 = vmatprep.mubr.msk.f32.mxu0 %vm711_vm0, %v710_v0  ;;  %v230_v1 = vld [vmem:[#allocation5] sm:$0xf]  ;;  %v229_v2 = vld [vmem:[%s202_s10] sm:$0xf]  ;;  %s450_s3 = sshll.u32 %s694_s16, 1  ;;  %s228_s11 = scalar_lea.vmem [#allocation7], %s443_s25 }
  0x47   : > { %457 = vmatpush3.msk.msra.mxu0 %vm242_vm1, %v230_v1  ;;  %s330_s12 = sadd.s32 %s690_s15, %s450_s3  ;;  %v446_v3 = vld [vmem:[%s927_s2] ss:$0 sm:$0xff]  ;;  %s334_s28 = sshll.u32 %s228_s11, 4  ;;  %s335_s28 = int_to_ptr.vmem [resolvable:$true] %s334_s28 }
  0x48   : > { %459 = vmatmul.mubr.msk.f32.vlgmr.msra.gmra.mxu0 %vm238_vm2, %v229_v2  ;;  %s451_s22 = sshll.u32 %s330_s12, 6  ;;  %s948_s4 = sld [smem:[#allocation15_spill]] }
  0x49   : > { %s318_s20 = scalar_lea.sflag [#allocation4], %s858_s1  ;;  %s606_s16 = scalar_lea.vmem %s335_s28, 64 }
  0x4a   : > { %p607_p1 = scmp.ne.s32.totalorder %s335_s28, %s606_s16  ;;  %p949_p4 = scmp.ne.s32.totalorder %s945_s9, 0 }
  0x4b   : > { %s712_s15 = smov [#allocation7]  }
  0x4c   : > { %p608_p8 = pnand %p607_p1, %p949_p4  ;;  %s610_s7 = sshll.u32 %s712_s15, 4  ;;  %s611_s7 = int_to_ptr.vmem [resolvable:$false] %s610_s7 }
  0x4d   : > { %s612_s21 = scalar_lea.vmem %s611_s7, 128  ;;  %p613_p10 = scmp.lt.s32.totalorder %s335_s28, %s611_s7 }
  0x4e   : > { %s878_s8 = scalar_lea.hbm %s948_s4, %s451_s22  ;;  %p609_p13 = pneg %p608_p8 }
  0x4f   : > { %p614_p0 = scmp.lt.s32.totalorder %s612_s21, %s606_s16 }
  0x51   : > { %p615_p2 = por %p614_p0, %p613_p10 }
  0x53   : > { %p616_p5 = pnand %p615_p2, %p609_p13 }
 0x108   : > { %v312_v4 = vpop.f32.mrf.mxu0 }
 0x109   : > { %v313_v5 = vadd.f32 %v446_v3, %v312_v4 }
 0x10a   : > { %v460_v6 = vpop.f32.mrf.mxu0 }
 0x10b   : > { %316 = vst [vmem:[%s228_s11] sm:$0xf] %v313_v5 }
 0x10c   : > { %619 = shalt.err (!%p616_p5)
}
 0x10d   : > { %s620_s27 = scalar_lea.hbm %s878_s8, 64  ;;  %s624_s29 = scalar_lea.hbm %s948_s4, 512 }
 0x10e   : > { %p621_p7 = scmp.ne.s32.totalorder %s878_s8, %s620_s27  ;;  %p625_p11 = scmp.lt.s32.totalorder %s878_s8, %s948_s4 }
 0x10f   : > { %p626_p12 = scmp.lt.s32.totalorder %s624_s29, %s620_s27 }
 0x110   : > { %p622_p9 = pnand %p621_p7, %p949_p4 }
 0x111   : > { %p627_p3 = por %p626_p12, %p625_p11 }
 0x112   : > { %p623_p6 = pneg %p622_p9 }
 0x114   : > { %p628_p1 = pnand %p627_p3, %p623_p6 }
 0x116   : > { %631 = shalt.err (!%p628_p1)
}
 0x117   : > { %467 = dma.vmem_to_hbm [thread:$0]  (%p949_p4), %s335_s28, 64, %s878_s8, %s318_s20  }
 0x118 PF: > { %s950_s12 = sld [smem:[#allocation11_spill]]  ;;  %p484_p8 = scmp.ge.s32.totalorder %s706_s19, 2 }
 0x119   : > { %s951_s24 = sld [smem:[#allocation12_spill]] }
 0x11e   : > { %s346_s26 = sand.u32 1, %s950_s12  }
 0x11f   : > { %p952_p13 = scmp.ne.s32.totalorder %s951_s24, 0  ;;  %s347_s22 = scalar_lea.sflag [#allocation4], %s346_s26 }
 0x121   : > { %p478_p10 = pnand %p484_p8, %p952_p13 }
 0x123   : > { %p479_p0 = pneg %p478_p10 }
 0x125   : > { %673 = dma.done.wait (%p479_p0), %s347_s22, 64  }
 0x126   : > { %675 = vsyncadd (%p479_p0), %s347_s22, 4294967232  ;;  %s20_s19 = sadd.s32 1, %s706_s19   ;;  %s953_s9 = sld [smem:[#allocation13_spill]] }
 0x127   : > { %p17_p2 = scmp.ge.s32.totalorder %s20_s19, 10   ;;  %s954_s12 = smov %s682_s13 }
 0x128   : > { %s955_s13 = smov %s686_s14  ;;  %s956_s14 = smov %s838_s5 }
 0x129   : > { %s957_s15 = smov %s698_s17  ;;  %s958_s16 = smov %s702_s18 }
 0x12a   : > { %s960_s18 = smov %s966_s6  ;;  %19 = sbr.rel (!%p17_p2) target bundleno = 11 (0xb), region = 81 }
 0x12c   : > { %s959_s17 = smov %s953_s9 }
 0x12f   :  { %352 = vsyncpa [#allocation3], 1 }
 0x130   :  { %354 = vsyncpa [#allocation3 + $0x1], 1 }
 0x131   :  { %355 = vsyncpa [#allocation6], 1 }
 0x132   :  { %356 = vsyncpa [#allocation4], 1 }
 0x133   :  { %358 = vsyncpa [#allocation4 + $0x1], 1 }

</bundles_post_ra>
